<compile_context>
chip_gen: v5e
topology: v5e:2x2
jax: 0.10.0
libtpu: 0.0.40
codegen_flags: <defaults>
</compile_context>

<pallas_src>
import functools

import jax
import jax.numpy as jnp
from jax.experimental import pallas as pl
from jax.experimental.pallas import tpu as pltpu

BN_EPS = 1e-5      # torch.nn.BatchNorm1d default eps (eval, default running stats)
B_TILE = 128       # batch tile (lane axis); multiple of 128 for lane-dense stores


def wrdcnv2_kernel(x_ref, mw_ref, cb_ref, w1_ref, b1_ref, w2_ref, b2_ref,
                   wo_ref, bo_ref, prob_ref, *, num_layers):
    """Per-batch-tile kernel, batch-on-lanes layout.

    x_ref   : (D, Bt)        activations, batch on the lane axis
    mw_ref  : (L, D, D)      masked cross weights (ni * W_i), kernel orientation
    cb_ref  : (L, D, 1)      cross biases as columns (lane-broadcast)
    w1_ref  : (H1, D), b1_ref: (H1, 1)   BN scale already folded in
    w2_ref  : (H2, H1), b2_ref: (H2, 1)  BN scale already folded in
    wo_ref  : (H2, 1), bo_ref: (1, 1)
    prob_ref: (1, Bt)        lane-dense sigmoid output
    """
    x0 = x_ref[...].astype(jnp.float32)                     # (D, Bt)
    x = x0

    # ---- Weighted restricted cross network (static unrolled, reduction kept whole) ----
    for i in range(num_layers):
        M = mw_ref[i]                                        # (D, D)
        xw = jnp.dot(M, x.astype(M.dtype),
                     preferred_element_type=jnp.float32)     # (D, Bt)
        x = x0 * (xw + cb_ref[i]) + x                        # cb: (D,1) lane-broadcast

    # ---- MLP (eval BN folded into weights; dropout = identity in eval) ----
    w1 = w1_ref[...]
    h = jnp.dot(w1, x.astype(w1.dtype),
                preferred_element_type=jnp.float32) + b1_ref[...]
    h = jnp.maximum(h, 0.0)
    w2 = w2_ref[...]
    h = jnp.dot(w2, h.astype(w2.dtype),
                preferred_element_type=jnp.float32) + b2_ref[...]
    h = jnp.maximum(h, 0.0)                                  # (H2, Bt)

    # ---- Output head: VPU multiply + sublane reduce (avoids 1-wide MXU result) ----
    p = jnp.sum(wo_ref[...] * h, axis=0, keepdims=True) + bo_ref[...]   # (1, Bt)
    prob_ref[...] = jax.nn.sigmoid(p)


def wrdcnv2_forward(embed_x, kparams, raw_W, *, num_layers, num_fields, embed_dim,
                    b_tile=B_TILE):
    """embed_x: (B, D) f32.  Returns (probs (B,), 1e-5 * reg_loss)."""
    B, D = embed_x.shape
    n_tiles = int(pl.cdiv(B, b_tile))
    B_pad = n_tiles * b_tile
    L = num_layers
    H1 = kparams["w1"].shape[0]
    H2 = kparams["w2"].shape[0]
    compute_dtype = kparams["mw"].dtype

    # Batch on lanes (layout plumbing done once in the wrapper); pad batch to tile.
    x_t = jnp.transpose(embed_x).astype(compute_dtype)       # (D, B)
    if B_pad != B:
        x_t = jnp.pad(x_t, ((0, 0), (0, B_pad - B)))

    flops = 2 * B_pad * (L * D * D + D * H1 + H1 * H2 + H2) + 6 * B_pad * D * L
    bytes_accessed = (int(x_t.size) * x_t.dtype.itemsize
                      + sum(int(v.size) * v.dtype.itemsize for v in kparams.values())
                      + B_pad * 4)

    const2 = lambda i: (0, 0)
    const3 = lambda i: (0, 0, 0)

    prob = pl.pallas_call(
        functools.partial(wrdcnv2_kernel, num_layers=num_layers),
        out_shape=jax.ShapeDtypeStruct((1, B_pad), jnp.float32),
        grid=(n_tiles,),
        in_specs=[
            pl.BlockSpec((D, b_tile), lambda i: (0, i)),      # activations: batch-tiled
            pl.BlockSpec((L, D, D), const3),                  # weights: resident in VMEM
            pl.BlockSpec((L, D, 1), const3),
            pl.BlockSpec((H1, D), const2),
            pl.BlockSpec((H1, 1), const2),
            pl.BlockSpec((H2, H1), const2),
            pl.BlockSpec((H2, 1), const2),
            pl.BlockSpec((H2, 1), const2),
            pl.BlockSpec((1, 1), const2),
        ],
        out_specs=pl.BlockSpec((1, b_tile), lambda i: (0, i)),  # lane-dense prob store
        compiler_params=pltpu.CompilerParams(
            dimension_semantics=("parallel",)),               # v7x: 2 TCs split batch
        cost_estimate=pl.CostEstimate(
            flops=int(flops), transcendentals=int(B_pad),
            bytes_accessed=int(bytes_accessed)),
    )(x_t, kparams["mw"], kparams["cb"], kparams["w1"], kparams["b1"],
      kparams["w2"], kparams["b2"], kparams["wo"], kparams["bo"])

    probs = prob[0, :B]

    # Batch-independent orthogonality reg loss, hoisted out of the kernel (plain JAX,
    # one batched einsum over (L*F*F, E, E)); only needed for training.
    F, E = num_fields, embed_dim
    fw = raw_W.reshape(L, F, E, F, E).transpose(0, 1, 3, 2, 4).reshape(-1, E, E)
    gram = jnp.einsum("kab,kcb->kac", fw, fw)
    reg = jnp.sum((jnp.eye(E, dtype=jnp.float32)[None] - gram) ** 2)
    return probs, 1e-5 * reg


# ---------------------------------------------------------------------------
# Parameter construction (mirrors torch init) + one-time kernel-layout prep.
# ---------------------------------------------------------------------------
def build_params(key, field_dims, embed_dim, num_layers, mlp_dims):
    F = len(field_dims)
    D = F * embed_dim
    H1, H2 = mlp_dims
    total_emb = int(sum(field_dims))
    ks = jax.random.split(key, 1 + num_layers + 6)

    def xavier(k, shape):
        fan_in, fan_out = shape[-2], shape[-1]
        bound = (6.0 / (fan_in + fan_out)) ** 0.5
        return jax.random.uniform(k, shape, jnp.float32, -bound, bound)

    def torch_linear(kw, kb, fan_out, fan_in):
        bound = 1.0 / (fan_in ** 0.5)
        w = jax.random.uniform(kw, (fan_out, fan_in), jnp.float32, -bound, bound)
        b = jax.random.uniform(kb, (fan_out,), jnp.float32, -bound, bound)
        return w, b

    emb_table = xavier(ks[0], (total_emb, embed_dim))
    N = jnp.ones((num_layers, F, F), jnp.float32)                       # torch.ones init
    W = jnp.stack([xavier(ks[1 + i], (D, D)) for i in range(num_layers)])
    b_cross = jnp.zeros((num_layers, D), jnp.float32)                   # torch.zeros init
    w1, b1 = torch_linear(ks[1 + num_layers], ks[2 + num_layers], H1, D)
    w2, b2 = torch_linear(ks[3 + num_layers], ks[4 + num_layers], H2, H1)
    wo, bo = torch_linear(ks[5 + num_layers], ks[6 + num_layers], 1, H2)
    return dict(emb_table=emb_table, N=N, W=W, b_cross=b_cross,
                w1=w1, b1=b1, w2=w2, b2=b2, wo=wo, bo=bo)


def prepare_kernel_params(raw, *, num_fields, embed_dim, compute_dtype=jnp.float32):
    """One-time host-side prep: apply the N-kron mask, orient weights for the
    batch-on-lanes kernel layout, and fold the eval-BN scale into the MLP."""
    L, D, _ = raw["W"].shape
    E = embed_dim
    ones_e = jnp.ones((E, E), jnp.float32)
    mw = jnp.stack([jnp.kron(raw["N"][i], ones_e) * raw["W"][i] for i in range(L)])
    bn = 1.0 / jnp.sqrt(jnp.float32(1.0 + BN_EPS))  # BN eval w/ default running stats
    # TODO(synk): if real BN running stats / affine params are loaded, replace the
    # scalar fold with per-feature scale/shift columns.
    return dict(
        mw=mw.astype(compute_dtype),                           # (L, D, D)
        cb=raw["b_cross"][:, :, None].astype(jnp.float32),     # (L, D, 1)
        w1=(raw["w1"] * bn).astype(compute_dtype),             # (H1, D)
        b1=(raw["b1"] * bn)[:, None].astype(jnp.float32),      # (H1, 1)
        w2=(raw["w2"] * bn).astype(compute_dtype),             # (H2, H1)
        b2=(raw["b2"] * bn)[:, None].astype(jnp.float32),      # (H2, 1)
        wo=raw["wo"].T.astype(jnp.float32),                    # (H2, 1)
        bo=raw["bo"][None, :].astype(jnp.float32),             # (1, 1)
    )


def embedding_lookup(x_idx, emb_table, field_dims):
    # FeaturesEmbedding: per-field offsets, then row gather (plain JAX glue).
    offsets = jnp.asarray(
        [0] + list(jnp.cumsum(jnp.asarray(field_dims))[:-1]), jnp.int32)
    rows = jnp.take(emb_table, x_idx + offsets[None, :], axis=0)        # (B, F, E)
    return rows.reshape(x_idx.shape[0], -1).astype(jnp.float32)         # (B, F*E)


def reference_forward(embed_x, raw, *, num_layers, num_fields, embed_dim):
    """Pure-JAX reference mirroring the PyTorch forward (eval mode) from raw params."""
    F, E, L = num_fields, embed_dim, num_layers
    x0 = x = embed_x
    reg = jnp.float32(0.0)
    ones_e = jnp.ones((E, E), jnp.float32)
    eye = jnp.eye(E, dtype=jnp.float32)
    for i in range(L):
        ni = jnp.kron(raw["N"][i], ones_e)
        xw = x @ (ni * raw["W"][i]).T
        x = x0 * (xw + raw["b_cross"][i]) + x
        fw = raw["W"][i].reshape(F, E, F, E).transpose(0, 2, 1, 3).reshape(-1, E, E)
        gram = jnp.einsum("kab,kcb->kac", fw, fw)
        reg = reg + jnp.sum((eye[None] - gram) ** 2)
    bn = 1.0 / jnp.sqrt(1.0 + BN_EPS)
    h = jnp.maximum((x @ raw["w1"].T + raw["b1"]) * bn, 0.0)
    h = jnp.maximum((h @ raw["w2"].T + raw["b2"]) * bn, 0.0)
    p = h @ raw["wo"].T + raw["bo"]
    return jax.nn.sigmoid(p)[:, 0], 1e-5 * reg


if __name__ == "__main__":
    # Small, module-consistent shapes; batch > B_TILE so the grid + padding path runs.
    field_dims = (10, 20, 30, 40)     # num_fields = 4
    embed_dim = 8                     # -> embed_output_dim D = 32
    num_layers = 2
    mlp_dims = (32, 16)
    batch = 200                       # -> 2 batch tiles of 128 (padded)

    key = jax.random.PRNGKey(0)
    kp, kx = jax.random.split(key)
    raw = build_params(kp, field_dims, embed_dim, num_layers, mlp_dims)
    # f32 compute here so the correctness check is tight; use jnp.bfloat16 on v6e/v7x.
    kparams = prepare_kernel_params(raw, num_fields=len(field_dims),
                                    embed_dim=embed_dim, compute_dtype=jnp.float32)

    maxvals = jnp.asarray(field_dims, jnp.int32)[None, :]
    x_idx = (jax.random.randint(kx, (batch, len(field_dims)), 0, 1 << 30) % maxvals
             ).astype(jnp.int32)
    embed_x = embedding_lookup(x_idx, raw["emb_table"], field_dims)

    probs, reg_loss = wrdcnv2_forward(
        embed_x, kparams, raw["W"],
        num_layers=num_layers, num_fields=len(field_dims), embed_dim=embed_dim)
    jax.block_until_ready((probs, reg_loss))

    ref_probs, ref_reg = reference_forward(
        embed_x, raw,
        num_layers=num_layers, num_fields=len(field_dims), embed_dim=embed_dim)

    assert probs.shape == (batch,)
    assert jnp.allclose(probs, ref_probs, rtol=1e-5, atol=1e-5)
    assert jnp.allclose(reg_loss, ref_reg, rtol=1e-5, atol=1e-5)
    print("KERNEL_OK")
</pallas_src>

<mosaic_0001>
module attributes {stable_mosaic.version = 11 : i64} {
  func.func @wrdcnv2_kernel(%arg0: i32, %arg1: memref<32x128xf32, #tpu.memory_space<vmem>>, %arg2: memref<2x32x32xf32, #tpu.memory_space<vmem>>, %arg3: memref<2x32x1xf32, #tpu.memory_space<vmem>>, %arg4: memref<32x32xf32, #tpu.memory_space<vmem>>, %arg5: memref<32x1xf32, #tpu.memory_space<vmem>>, %arg6: memref<16x32xf32, #tpu.memory_space<vmem>>, %arg7: memref<16x1xf32, #tpu.memory_space<vmem>>, %arg8: memref<16x1xf32, #tpu.memory_space<vmem>>, %arg9: memref<1x1xf32, #tpu.memory_space<vmem>>, %arg10: memref<1x128xf32, #tpu.memory_space<vmem>>) attributes {dimension_semantics = [#tpu.dimension_semantics<parallel>], iteration_bounds = array<i64: 2>, scalar_prefetch = 0 : i64, scratch_operands = 0 : i64, tpu.core_type = #tpu.core_type<tc>, window_params = [{transform_indices = @transform_0, window_bounds = array<i64: 32, 128>}, {pipeline_mode = #tpu.pipeline_mode<synchronous>, transform_indices = @transform_1, window_bounds = array<i64: 2, 32, 32>}, {pipeline_mode = #tpu.pipeline_mode<synchronous>, transform_indices = @transform_2, window_bounds = array<i64: 2, 32, 1>}, {pipeline_mode = #tpu.pipeline_mode<synchronous>, transform_indices = @transform_3, window_bounds = array<i64: 32, 32>}, {pipeline_mode = #tpu.pipeline_mode<synchronous>, transform_indices = @transform_4, window_bounds = array<i64: 32, 1>}, {pipeline_mode = #tpu.pipeline_mode<synchronous>, transform_indices = @transform_5, window_bounds = array<i64: 16, 32>}, {pipeline_mode = #tpu.pipeline_mode<synchronous>, transform_indices = @transform_6, window_bounds = array<i64: 16, 1>}, {pipeline_mode = #tpu.pipeline_mode<synchronous>, transform_indices = @transform_7, window_bounds = array<i64: 16, 1>}, {pipeline_mode = #tpu.pipeline_mode<synchronous>, transform_indices = @transform_8, window_bounds = array<i64: 1, 1>}, {transform_indices = @transform_9, window_bounds = array<i64: 1, 128>}]} {
    %c0 = arith.constant 0 : index
    %c0_0 = arith.constant 0 : index
    %0 = vector.load %arg1[%c0, %c0_0] : memref<32x128xf32, #tpu.memory_space<vmem>>, vector<32x128xf32>
    %c0_1 = arith.constant 0 : index
    %c0_2 = arith.constant 0 : index
    %c0_3 = arith.constant 0 : index
    %1 = vector.load %arg2[%c0_1, %c0_2, %c0_3] : memref<2x32x32xf32, #tpu.memory_space<vmem>>, vector<1x32x32xf32>
    %2 = vector.shape_cast %1 : vector<1x32x32xf32> to vector<32x32xf32>
    %cst = arith.constant dense<0.000000e+00> : vector<32x128xf32>
    %3 = tpu.matmul %2, %0, %cst {dimension_numbers = #tpu.dot_dimension_numbers<[1], [0], [0], [1], [0, 0, 1, 1], [], []>} : vector<32x32xf32>, vector<32x128xf32>, vector<32x128xf32> -> vector<32x128xf32>
    %c0_4 = arith.constant 0 : index
    %c0_5 = arith.constant 0 : index
    %c0_6 = arith.constant 0 : index
    %4 = vector.load %arg3[%c0_4, %c0_5, %c0_6] : memref<2x32x1xf32, #tpu.memory_space<vmem>>, vector<1x32x1xf32>
    %5 = vector.shape_cast %4 : vector<1x32x1xf32> to vector<32x1xf32>
    %6 = vector.broadcast %5 : vector<32x1xf32> to vector<32x128xf32>
    %7 = arith.addf %3, %6 : vector<32x128xf32>
    %8 = arith.mulf %0, %7 : vector<32x128xf32>
    %9 = arith.addf %8, %0 : vector<32x128xf32>
    %c1 = arith.constant 1 : index
    %c0_7 = arith.constant 0 : index
    %c0_8 = arith.constant 0 : index
    %10 = vector.load %arg2[%c1, %c0_7, %c0_8] : memref<2x32x32xf32, #tpu.memory_space<vmem>>, vector<1x32x32xf32>
    %11 = vector.shape_cast %10 : vector<1x32x32xf32> to vector<32x32xf32>
    %cst_9 = arith.constant dense<0.000000e+00> : vector<32x128xf32>
    %12 = tpu.matmul %11, %9, %cst_9 {dimension_numbers = #tpu.dot_dimension_numbers<[1], [0], [0], [1], [0, 0, 1, 1], [], []>} : vector<32x32xf32>, vector<32x128xf32>, vector<32x128xf32> -> vector<32x128xf32>
    %c1_10 = arith.constant 1 : index
    %c0_11 = arith.constant 0 : index
    %c0_12 = arith.constant 0 : index
    %13 = vector.load %arg3[%c1_10, %c0_11, %c0_12] : memref<2x32x1xf32, #tpu.memory_space<vmem>>, vector<1x32x1xf32>
    %14 = vector.shape_cast %13 : vector<1x32x1xf32> to vector<32x1xf32>
    %15 = vector.broadcast %14 : vector<32x1xf32> to vector<32x128xf32>
    %16 = arith.addf %12, %15 : vector<32x128xf32>
    %17 = arith.mulf %0, %16 : vector<32x128xf32>
    %18 = arith.addf %17, %9 : vector<32x128xf32>
    %c0_13 = arith.constant 0 : index
    %c0_14 = arith.constant 0 : index
    %19 = vector.load %arg4[%c0_13, %c0_14] : memref<32x32xf32, #tpu.memory_space<vmem>>, vector<32x32xf32>
    %cst_15 = arith.constant dense<0.000000e+00> : vector<32x128xf32>
    %20 = tpu.matmul %19, %18, %cst_15 {dimension_numbers = #tpu.dot_dimension_numbers<[1], [0], [0], [1], [0, 0, 1, 1], [], []>} : vector<32x32xf32>, vector<32x128xf32>, vector<32x128xf32> -> vector<32x128xf32>
    %c0_16 = arith.constant 0 : index
    %c0_17 = arith.constant 0 : index
    %21 = vector.load %arg5[%c0_16, %c0_17] : memref<32x1xf32, #tpu.memory_space<vmem>>, vector<32x1xf32>
    %22 = vector.broadcast %21 : vector<32x1xf32> to vector<32x128xf32>
    %23 = arith.addf %20, %22 : vector<32x128xf32>
    %cst_18 = arith.constant 0.000000e+00 : f32
    %24 = vector.broadcast %cst_18 : f32 to vector<32x128xf32>
    %25 = arith.maximumf %23, %24 : vector<32x128xf32>
    %c0_19 = arith.constant 0 : index
    %c0_20 = arith.constant 0 : index
    %26 = vector.load %arg6[%c0_19, %c0_20] : memref<16x32xf32, #tpu.memory_space<vmem>>, vector<16x32xf32>
    %cst_21 = arith.constant dense<0.000000e+00> : vector<16x128xf32>
    %27 = tpu.matmul %26, %25, %cst_21 {dimension_numbers = #tpu.dot_dimension_numbers<[1], [0], [0], [1], [0, 0, 1, 1], [], []>} : vector<16x32xf32>, vector<32x128xf32>, vector<16x128xf32> -> vector<16x128xf32>
    %c0_22 = arith.constant 0 : index
    %c0_23 = arith.constant 0 : index
    %28 = vector.load %arg7[%c0_22, %c0_23] : memref<16x1xf32, #tpu.memory_space<vmem>>, vector<16x1xf32>
    %29 = vector.broadcast %28 : vector<16x1xf32> to vector<16x128xf32>
    %30 = arith.addf %27, %29 : vector<16x128xf32>
    %cst_24 = arith.constant 0.000000e+00 : f32
    %31 = vector.broadcast %cst_24 : f32 to vector<16x128xf32>
    %32 = arith.maximumf %30, %31 : vector<16x128xf32>
    %c0_25 = arith.constant 0 : index
    %c0_26 = arith.constant 0 : index
    %33 = vector.load %arg8[%c0_25, %c0_26] : memref<16x1xf32, #tpu.memory_space<vmem>>, vector<16x1xf32>
    %34 = vector.broadcast %33 : vector<16x1xf32> to vector<16x128xf32>
    %35 = arith.mulf %34, %32 : vector<16x128xf32>
    %cst_27 = arith.constant dense<0.000000e+00> : vector<128xf32>
    %36 = vector.multi_reduction <add>, %35, %cst_27 [0] : vector<16x128xf32> to vector<128xf32>
    %37 = vector.shape_cast %36 : vector<128xf32> to vector<1x128xf32>
    %c0_28 = arith.constant 0 : index
    %c0_29 = arith.constant 0 : index
    %38 = vector.load %arg9[%c0_28, %c0_29] : memref<1x1xf32, #tpu.memory_space<vmem>>, vector<1x1xf32>
    %39 = vector.broadcast %38 : vector<1x1xf32> to vector<1x128xf32>
    %40 = arith.addf %37, %39 : vector<1x128xf32>
    %41 = arith.negf %40 : vector<1x128xf32>
    %42 = math.exp %41 : vector<1x128xf32>
    %cst_30 = arith.constant 1.000000e+00 : f32
    %43 = vector.broadcast %cst_30 : f32 to vector<1x128xf32>
    %44 = arith.addf %43, %42 : vector<1x128xf32>
    %45 = arith.divf %43, %44 : vector<1x128xf32>
    %c0_31 = arith.constant 0 : index
    %c0_32 = arith.constant 0 : index
    %46 = vector.load %arg10[%c0_31, %c0_32] : memref<1x128xf32, #tpu.memory_space<vmem>>, vector<1x128xf32>
    tpu.vector_store %arg10[%c0_31, %c0_32], %45 {strides = array<i32>} : memref<1x128xf32, #tpu.memory_space<vmem>>, vector<1x128xf32>,
    return
  }
  func.func @transform_0(%arg0: i32) -> (i32, i32) {
    %c0_i32 = arith.constant 0 : i32
    %c0_i32_0 = arith.constant 0 : i32
    return %c0_i32, %arg0 : i32, i32
  }
  func.func @transform_1(%arg0: i32) -> (i32, i32, i32) {
    %c0_i32 = arith.constant 0 : i32
    %c0_i32_0 = arith.constant 0 : i32
    %c0_i32_1 = arith.constant 0 : i32
    %c0_i32_2 = arith.constant 0 : i32
    return %c0_i32, %c0_i32_0, %c0_i32_1 : i32, i32, i32
  }
  func.func @transform_2(%arg0: i32) -> (i32, i32, i32) {
    %c0_i32 = arith.constant 0 : i32
    %c0_i32_0 = arith.constant 0 : i32
    %c0_i32_1 = arith.constant 0 : i32
    %c0_i32_2 = arith.constant 0 : i32
    return %c0_i32, %c0_i32_0, %c0_i32_1 : i32, i32, i32
  }
  func.func @transform_3(%arg0: i32) -> (i32, i32) {
    %c0_i32 = arith.constant 0 : i32
    %c0_i32_0 = arith.constant 0 : i32
    %c0_i32_1 = arith.constant 0 : i32
    return %c0_i32, %c0_i32_0 : i32, i32
  }
  func.func @transform_4(%arg0: i32) -> (i32, i32) {
    %c0_i32 = arith.constant 0 : i32
    %c0_i32_0 = arith.constant 0 : i32
    %c0_i32_1 = arith.constant 0 : i32
    return %c0_i32, %c0_i32_0 : i32, i32
  }
  func.func @transform_5(%arg0: i32) -> (i32, i32) {
    %c0_i32 = arith.constant 0 : i32
    %c0_i32_0 = arith.constant 0 : i32
    %c0_i32_1 = arith.constant 0 : i32
    return %c0_i32, %c0_i32_0 : i32, i32
  }
  func.func @transform_6(%arg0: i32) -> (i32, i32) {
    %c0_i32 = arith.constant 0 : i32
    %c0_i32_0 = arith.constant 0 : i32
    %c0_i32_1 = arith.constant 0 : i32
    return %c0_i32, %c0_i32_0 : i32, i32
  }
  func.func @transform_7(%arg0: i32) -> (i32, i32) {
    %c0_i32 = arith.constant 0 : i32
    %c0_i32_0 = arith.constant 0 : i32
    %c0_i32_1 = arith.constant 0 : i32
    return %c0_i32, %c0_i32_0 : i32, i32
  }
  func.func @transform_8(%arg0: i32) -> (i32, i32) {
    %c0_i32 = arith.constant 0 : i32
    %c0_i32_0 = arith.constant 0 : i32
    %c0_i32_1 = arith.constant 0 : i32
    return %c0_i32, %c0_i32_0 : i32, i32
  }
  func.func @transform_9(%arg0: i32) -> (i32, i32) {
    %c0_i32 = arith.constant 0 : i32
    %c0_i32_0 = arith.constant 0 : i32
    return %c0_i32, %arg0 : i32, i32
  }
}

</mosaic_0001>

<bundles_post_ra>
// kernel: tpu_custom_call.1
= control target key start
LH: loop header
LB: loop body
LE: loop exit
PB: predicated region body
PF: predicated region fallthrough
CT: control target
= control target key end

     0   :  { %s1369_s0 = inlined_call_operand.vmem [shape: f32[32,256], index: 0, kind: input, shape index: {}]   ;;  %s1370_s1 = inlined_call_operand.vmem [shape: f32[2,32,32], index: 1, kind: input, shape index: {}]   ;;  %s1371_s2 = inlined_call_operand.vmem [shape: f32[2,32,1], index: 2, kind: input, shape index: {}]   ;;  %s1372_s3 = inlined_call_operand.hbm [shape: f32[32,32], index: 3, kind: input, shape index: {}]   ;;  %s1373_s4 = inlined_call_operand.vmem [shape: f32[32,1], index: 4, kind: input, shape index: {}]   ;;  %s1374_s5 = inlined_call_operand.hbm [shape: f32[16,32], index: 5, kind: input, shape index: {}]   ;;  %s1375_s6 = inlined_call_operand.vmem [shape: f32[16,1], index: 6, kind: input, shape index: {}]   ;;  %s1376_s7 = inlined_call_operand.vmem [shape: f32[16,1], index: 7, kind: input, shape index: {}]   ;;  %s1377_s8 = inlined_call_operand.<no memory space> [shape: f32[1,1], index: 8, kind: input, shape index: {}]   ;;  %s1378_s9 = inlined_call_operand.hbm [shape: f32[1,256], index: 9, kind: output, shape index: {}]  }
   0x1   :  { %1379 = sst [smem:[#allocation13_spill]] %s1372_s3  ;;  %v14_v0 = vstv %s1377_s8 }
   0x2   :  { %15 = vst [vmem:[#allocation2] sm:$0x1] %v14_v0 }
   0x3   :  { %16 = vsyncpa [#allocation5], 0 }
   0x4   :  { %17 = vsyncpa [#allocation8], 0 }
   0x5   :  { %18 = vsyncpa [#allocation6], 0 }
   0x6   :  { %20 = vsyncpa [#allocation6 + $0x1], 0  ;;  %s1133_s11 = smov 0   ;;  %s1135_s12 = smov 0  }
   0x7   :  { %s1137_s13 = smov 0   ;;  %s1139_s14 = smov 0  }
   0x8 LB: > { %s1154_s8 = sadd.s32 4294967295, %s1073_s14   ;;  %s837_s15 = sadd.s32 4294967294, %s1073_s14   ;;  %s1073_s14 = sphi %s1139_s14, %s1388_s14   ;;  %s1069_s13 = sphi %s1137_s13, %s1387_s13   ;;  %s1065_s12 = sphi %s1135_s12, %s1386_s12   ;;  %s1061_s11 = sphi %s1133_s11, %s1385_s11  }
   0x9   : > { %s1158_s16 = sadd.s32 1, %s1073_s14   ;;  %s33_s17 = sadd.s32 1, %s1069_s13 }
   0xa   : > { %s30_s18 = ssub.s32 %s1073_s14, %s1158_s16  ;;  %p40_p0 = scmp.ne.s32.totalorder %s1069_s13, %s1065_s12 }
   0xb   : > { %p31_p1 = scmp.eq.s32.totalorder %s30_s18, 0  ;;  %p41_p2 = scmp.eq.s32.totalorder %s1073_s14, 0 }
   0xc   : > { %p238_p3 = scmp.eq.s32.totalorder %s1154_s8, 1  ;;  %p243_p4 = scmp.ne.s32.totalorder %s1065_s12, %s1061_s11 }
   0xd   : > { %s1170_s19 = scalar_select %p31_p1, %s1069_s13, %s33_s17  }
   0xe   : > { %p1172_p5 = por %p41_p2, %p40_p0  ;;  %p1176_p6 = por %p238_p3, %p40_p0 }
   0xf   : > { %p244_p7 = scmp.eq.s32.totalorder %s837_s15, 1  ;;  %p838_p8 = scmp.ge.s32.totalorder %s1073_s14, 1 }
  0x10   : > { %p251_p9 = scmp.lt.s32.totalorder %s1073_s14, 3  ;;  %p894_p11 = scmp.eq.s32.totalorder %s1154_s8, 0 }
  0x11   : > { %p1182_p10 = por %p244_p7, %p243_p4  ;;  %s1384_s3 = sld [smem:[#allocation13_spill]] }
  0x12   : > { %p1187_p12 = pnand %p838_p8, %p251_p9  ;;  %s1075_s27 = smov [#allocation4]  }
  0x13   : > { %s270_s28 = sshll.u32 %s1075_s27, 4  ;;  %s285_s10 = sshll.u32 %s1374_s5, 4  ;;  %s271_s28 = int_to_ptr.vmem [resolvable:$true] %s270_s28  ;;  %s286_s10 = int_to_ptr.hbm [resolvable:$true] %s285_s10 }
  0x14   : > { %p883_p13 = pneg %p1187_p12  ;;  %s1076_s15 = smov 128  }
  0x15   : > { %s1077_s17 = smov 8   ;;  %s1078_s18 = smov [#allocation7]  }
  0x16   : > { %p884_p0 = pnand %p894_p11, %p883_p13  ;;  %s287_s24 = sshll.u32 %s1078_s18, 4  ;;  %s288_s24 = int_to_ptr.vmem [resolvable:$true] %s287_s24 }
  0x17   : > { %s268_s26 = sshll.u32 %s1384_s3, 4  ;;  %p841_p1 = scmp.ge.s32.totalorder %s1073_s14, 2  ;;  %s269_s26 = int_to_ptr.hbm [resolvable:$true] %s268_s26 }
  0x18   : > { %886 = dma.hbm_to_vmem [thread:$0]  (!%p884_p0), %s269_s26, 512, %s271_s28, [#allocation5], %s1076_s15, %s1076_s15, %s1077_s17  }
  0x19   : > { %889 = dma.hbm_to_vmem [thread:$0]  (!%p884_p0), %s286_s10, 256, %s288_s24, [#allocation8], %s1076_s15, %s1076_s15, %s1077_s17  }
  0x1a   : > { %306 = sbr.rel (%p841_p1) target bundleno = 39 (0x27), region = 48 }
  0x1f   : > { %309 = sbr.rel (!%p1172_p5) target bundleno = 39 (0x27), region = 52  ;;  %s311_s25 = sand.u32 (%p1172_p5), 1, %s1069_s13  }
  0x20   : > { %s843_s27 = sshll.u32 (%p1172_p5), %s1073_s14, 3  ;;  %s842_s29 = sshll.u32 (%p1172_p5), %s311_s25, 5 }
  0x21   : > { %s315_s26 = scalar_lea.vmem (%p1172_p5), %s1369_s0, %s843_s27  ;;  %s313_s28 = scalar_lea.vmem (%p1172_p5), [#allocation3], %s842_s29 }
  0x22   : > { %v350_v1 = vld [vmem:[%s315_s26] sm:$0xff] (%p1172_p5)  ;;  %v352_v2 = vld [vmem:[%s315_s26 + $0x10] sm:$0xff] (%p1172_p5) }
  0x23   : > { %v354_v3 = vld [vmem:[%s315_s26 + $0x20] sm:$0xff] (%p1172_p5)  ;;  %351 = vst [vmem:[%s313_s28] sm:$0xff] (%p1172_p5), %v350_v1  ;;  %v356_v4 = vld [vmem:[%s315_s26 + $0x30] sm:$0xff] (%p1172_p5) }
  0x24   : > { %353 = vst [vmem:[%s313_s28 + $0x8] sm:$0xff] %v352_v2 }
  0x25   : > { %355 = vst [vmem:[%s313_s28 + $0x10] sm:$0xff] %v354_v3 }
  0x26   : > { %357 = vst [vmem:[%s313_s28 + $0x18] sm:$0xff] %v356_v4 }
  0x27 PF: > { %366 = sbr.rel (%p1187_p12) target bundleno = 743 (0x2e7), region = 90  ;;  %s1214_s20 = sand.u32 (!%p1187_p12), 1, %s1065_s12  }
  0x28   : > { %s845_s3 = sshll.u32 (!%p1187_p12), %s1214_s20, 5 }
  0x29   : > { %s371_s10 = scalar_lea.vmem (!%p1187_p12), [#allocation3], %s845_s3 }
  0x2c   : > { %1048 = dma.done.wait (%p894_p11), [#allocation5], 512  }
  0x2d   : > { %1050 = vsyncadd (%p894_p11), [#allocation5], 4294966784 }
  0x2e   : > { %1052 = dma.done.wait (%p894_p11), [#allocation8], 256  }
  0x2f   : > { %1054 = vsyncadd (%p894_p11), [#allocation8], 4294967040  ;;  %v1079_v5 = vmov 0   ;;  %v424_v6 = vld [vmem:[%s1371_s2 + $0x18] sm:$0xff]  ;;  %v422_v7 = vld [vmem:[%s1371_s2 + $0x8] sm:$0xff]  ;;  %vm445_vm0 = vcmask 261120   ;;  %s750_s3 = scalar_lea.hbm %s1378_s9, %s1154_s8 }
  0x30   : > { %937 = vset.pattern.permute.xlu1 %v1079_v5  ;;  %936 = vset.pattern.permute.xlu0 %v1079_v5  ;;  %v1231_v8 = vld [vmem:[%s371_s10 + $0x18] sm:$0xff]  ;;  %v1233_v9 = vld [vmem:[%s371_s10 + $0x10] sm:$0xff]  ;;  %v1236_v10 = vld [vmem:[%s371_s10 + $0x8] sm:$0xff]  ;;  %s754_s15 = sshll.u32 %s750_s3, 4  ;;  %s742_s8 = scalar_lea.sflag [#allocation6], %s1214_s20  ;;  %s755_s15 = int_to_ptr.hbm [resolvable:$true] %s754_s15 }
  0x31   : > { %938 = vset.pattern.permute.xlu2 %v1079_v5  ;;  %442 = vperm.xlu0 %936, %v424_v6   ;;  %v1239_v11 = vld [vmem:[%s371_s10] sm:$0xff]  ;;  %v423_v13 = vld [vmem:[%s1371_s2 + $0x10] sm:$0xff]  ;;  %v420_v21 = vld [vmem:[%s1370_s1 + $0x18] sm:$0xff]  ;;  %s412_s10 = scalar_lea.vmem [#allocation9], %s1214_s20  ;;  %s1017_s17 = sshra.s32 %s755_s15, 4  ;;  %s1018_s17 = int_to_ptr.hbm [resolvable:$true] %s1017_s17 }
  0x32   : > { %432 = vperm.xlu1 %937, %v422_v7   ;;  %470 = vmatpush.msra.mxu0 %v1231_v8  ;;  %v417_v12 = vld [vmem:[%s1370_s1] sm:$0xff]  ;;  %v418_v15 = vld [vmem:[%s1370_s1 + $0x8] sm:$0xff]  ;;  %v419_v18 = vld [vmem:[%s1370_s1 + $0x10] sm:$0xff]  ;;  %s752_s23 = sshll.u32 %s412_s10, 4  ;;  %s1019_s18 = scalar_lea.hbm %s1018_s17, 1  ;;  %s753_s23 = int_to_ptr.vmem [resolvable:$true] %s752_s23 }
  0x33   : > { %v421_v14 = vld [vmem:[%s1371_s2] sm:$0xff]  ;;  %v857_v16 = vld [vmem:[%s1371_s2 + $0x28] sm:$0xff]  ;;  %v580_v19 = vld [vmem:[%s1373_s4 + $0x10] sm:$0xff]  ;;  %p1020_p2 = scmp.ne.s32.totalorder %s1018_s17, %s1019_s18  ;;  %s1023_s27 = scalar_lea.hbm %s1378_s9, 2 }
  0x34   : > { %471 = vmatpush.msra.mxu0 %v1233_v9  ;;  %v856_v17 = vld [vmem:[%s1371_s2 + $0x20] sm:$0xff]  ;;  %v579_v20 = vld [vmem:[%s1373_s4 + $0x8] sm:$0xff]  ;;  %v859_v32 = vld [vmem:[%s1371_s2 + $0x38] sm:$0xff]  ;;  %p1024_p5 = scmp.lt.s32.totalorder %s1018_s17, %s1378_s9  ;;  %p1025_p7 = scmp.lt.s32.totalorder %s1023_s27, %s1019_s18 }
  0x35   : > { %v649_v22 = vld [vmem:[%s1375_s6] sm:$0xff]  ;;  %v650_v23 = vld [vmem:[%s1375_s6 + $0x8] sm:$0xff]  ;;  %522 = vperm.xlu2 %938, %v859_v32   ;;  %v858_v43 = vld [vmem:[%s1371_s2 + $0x30] sm:$0xff]  ;;  %p1021_p3 = pnand %p1020_p2, %p1176_p6 }
  0x36   : > { %472 = vmatpush.msra.mxu0 %v1236_v10  ;;  %v693_v24 = vld [vmem:[%s1376_s7 + $0x8] sm:$0xff]  ;;  %v713_v25 = vld [vmem:[#allocation2] sm:$0x1]  ;;  %v581_v49 = vld [vmem:[%s1373_s4 + $0x18] sm:$0xff]  ;;  %p1026_p8 = por %p1025_p7, %p1024_p5 }
  0x37   : > { %v852_v48 = vld [vmem:[%s1370_s1 + $0x20] sm:$0xff]  ;;  %v853_v50 = vld [vmem:[%s1370_s1 + $0x28] sm:$0xff]  ;;  %v854_v52 = vld [vmem:[%s1370_s1 + $0x30] sm:$0xff]  ;;  %p1022_p4 = pneg %p1021_p3 }
  0x38   : > { %473 = vmatpush.msra.mxu0 %v1239_v11  ;;  %v578_v51 = vld [vmem:[%s1373_s4] sm:$0xff]  ;;  %v855_v54 = vld [vmem:[%s1370_s1 + $0x38] sm:$0xff]  ;;  %v648_v32 = vld [vmem:[#allocation7 + $0x8] sm:$0xff] }
  0x39   : > { %848 = vmatmul.msk.f32.vlgmr.msra.gmra.mxu0 %vm445_vm0, %v417_v12  ;;  %437 = vperm.xlu0 %936, %v423_v13   ;;  %v692_v53 = vld [vmem:[%s1376_s7] sm:$0xff]  ;;  %p1027_p9 = pnand %p1026_p8, %p1022_p4 }
  0x3a   : > { %427 = vperm.xlu1 %937, %v421_v14  }
  0x3d   : > { %517 = vperm.xlu2 %938, %v858_v43  }
  0x41   : > { %849 = vmatmul.msk.f32.gmra.mxu0 %vm445_vm0, %v418_v15  ;;  %512 = vperm.xlu0 %936, %v857_v16   ;;  %v574_v15 = vld [vmem:[#allocation4] sm:$0xff]  ;;  %v575_v16 = vld [vmem:[#allocation4 + $0x8] sm:$0xff] }
  0x42   : > { %507 = vperm.xlu1 %937, %v856_v17  }
  0x45   : > { %599 = vperm.xlu2 %938, %v581_v49  }
  0x49   : > { %850 = vmatmul.msk.f32.gmra.mxu0 %vm445_vm0, %v419_v18  ;;  %594 = vperm.xlu0 %936, %v580_v19  }
  0x4a   : > { %589 = vperm.xlu1 %937, %v579_v20  }
  0x4d   : > { %584 = vperm.xlu2 %938, %v578_v51  }
  0x51   : > { %851 = vmatmul.msk.f32.gmra.mxu0 %vm445_vm0, %v420_v21  ;;  %653 = vperm.xlu0 %936, %v649_v22  }
  0x52   : > { %658 = vperm.xlu1 %937, %v650_v23  }
  0x55   : > { %696 = vperm.xlu2 %938, %v692_v53  }
  0x59   : > { %701 = vperm.xlu0 %936, %v693_v24  }
  0x5a   : > { %716 = vperm.xlu1 %937, %v713_v25  }
  0x8f   : > { %v523_v57 = vpop.permute.xlu2 %522 }
  0x97   : > { %v518_v59 = vpop.permute.xlu2 %517 }
  0x9f   : > { %v600_v18 = vpop.permute.xlu2 %599 }
  0xa3   : > { %v443_v28 = vpop.permute.xlu0 %442 }
  0xa4   : > { %v433_v29 = vpop.permute.xlu1 %432 }
  0xab   : > { %v438_v31 = vpop.permute.xlu0 %437 }
  0xac   : > { %v428_v37 = vpop.permute.xlu1 %427 }
  0xb3   : > { %v513_v61 = vpop.permute.xlu0 %512 }
  0xb4   : > { %v508_v1 = vpop.permute.xlu1 %507 }
  0xb6   : > { %v475_v26 = vpop.f32.mrf.mxu0 }
  0xb7   : > { %v476_v38 = vadd.f32 %v475_v26, %v428_v37  ;;  %v585_v26 = vpop.permute.xlu2 %584 }
  0xb9   : > { %v487_v44 = vmul.f32 %v476_v38, %v1239_v11 }
  0xbb   : > { %v491_v47 = vadd.f32 %v487_v44, %v1239_v11  ;;  %v595_v19 = vpop.permute.xlu0 %594 }
  0xbc   : > { %v590_v23 = vpop.permute.xlu1 %589 }
  0xbe   : > { %v478_v27 = vpop.f32.mrf.mxu0 }
  0xbf   : > { %v479_v35 = vadd.f32 %v478_v27, %v433_v29 }
  0xc1   : > { %v488_v41 = vmul.f32 %v479_v35, %v1236_v10 }
  0xc3   : > { %v492_v46 = vadd.f32 %v488_v41, %v1236_v10 }
  0xc6   : > { %v481_v30 = vpop.f32.mrf.mxu0 }
  0xc7   : > { %v482_v33 = vadd.f32 %v481_v30, %v438_v31  ;;  %v647_v31 = vld [vmem:[#allocation7] sm:$0xff] }
  0xc9   : > { %v489_v39 = vmul.f32 %v482_v33, %v1233_v9 }
  0xcb   : > { %v493_v45 = vadd.f32 %v489_v39, %v1233_v9 }
  0xce   : > { %v484_v34 = vpop.f32.mrf.mxu0 }
  0xcf   : > { %v485_v36 = vadd.f32 %v484_v34, %v443_v28  ;;  %v654_v34 = vpop.permute.xlu0 %653 }
  0xd1   : > { %v490_v40 = vmul.f32 %v485_v36, %v1231_v8  ;;  %v659_v36 = vpop.permute.xlu1 %658 }
  0xd3   : > { %v494_v42 = vadd.f32 %v490_v40, %v1231_v8 }
  0xd5   : > { %549 = vmatpush.msra.mxu1 %v494_v42 }
  0xd7   : > { %550 = vmatpush.msra.mxu1 %v493_v45  ;;  %v702_v41 = vpop.permute.xlu0 %701 }
  0xd9   : > { %551 = vmatpush.msra.mxu1 %v492_v46 }
  0xdb   : > { %552 = vmatpush.msra.mxu1 %v491_v47 }
  0xdc   : > { %860 = vmatmul.msk.f32.vlgmr.msra.gmra.mxu1 %vm445_vm0, %v852_v48 }
  0xe4   : > { %861 = vmatmul.msk.f32.gmra.mxu1 %vm445_vm0, %v853_v50  ;;  %v717_v50 = vpop.permute.xlu1 %716 }
  0xec   : > { %862 = vmatmul.msk.f32.gmra.mxu1 %vm445_vm0, %v854_v52  ;;  %v719_v52 = vperm.slane %v717_v50, 0 }
  0xf4   : > { %863 = vmatmul.msk.f32.gmra.mxu1 %vm445_vm0, %v855_v54 }
 0x159   : > { %v554_v55 = vpop.f32.mrf.mxu1 }
 0x15a   : > { %v555_v2 = vadd.f32 %v554_v55, %v508_v1 }
 0x15c   : > { %v566_v7 = vmul.f32 %v555_v2, %v1239_v11 }
 0x15e   : > { %v570_v14 = vadd.f32 %v566_v7, %v491_v47 }
 0x161   : > { %v557_v56 = vpop.f32.mrf.mxu1 }
 0x162   : > { %v558_v63 = vadd.f32 %v557_v56, %v513_v61 }
 0x164   : > { %v567_v5 = vmul.f32 %v558_v63, %v1236_v10 }
 0x166   : > { %v571_v13 = vadd.f32 %v567_v5, %v492_v46 }
 0x169   : > { %v560_v58 = vpop.f32.mrf.mxu1 }
 0x16a   : > { %v561_v60 = vadd.f32 %v560_v58, %v518_v59 }
 0x16c   : > { %v568_v3 = vmul.f32 %v561_v60, %v1233_v9  ;;  %v576_v9 = vld [vmem:[#allocation4 + $0x10] sm:$0xff] }
 0x16e   : > { %v572_v12 = vadd.f32 %v568_v3, %v493_v45 }
 0x171   : > { %v563_v62 = vpop.f32.mrf.mxu1 }
 0x172   : > { %v564_v0 = vadd.f32 %v563_v62, %v523_v57 }
 0x174   : > { %v569_v4 = vmul.f32 %v564_v0, %v1231_v8  ;;  %v577_v8 = vld [vmem:[#allocation4 + $0x18] sm:$0xff] }
 0x176   : > { %v573_v6 = vadd.f32 %v569_v4, %v494_v42  ;;  %v697_v42 = vpop.permute.xlu2 %696 }
 0x178   : > { %626 = vmatpush.msra.mxu2 %v573_v6 }
 0x17a   : > { %627 = vmatpush.msra.mxu2 %v572_v12 }
 0x17c   : > { %628 = vmatpush.msra.mxu2 %v571_v13 }
 0x17e   : > { %629 = vmatpush.msra.mxu2 %v570_v14 }
 0x17f   : > { %864 = vmatmul.msk.f32.vlgmr.msra.gmra.mxu2 %vm445_vm0, %v574_v15 }
 0x187   : > { %865 = vmatmul.msk.f32.gmra.mxu2 %vm445_vm0, %v575_v16 }
 0x18f   : > { %866 = vmatmul.msk.f32.gmra.mxu2 %vm445_vm0, %v576_v9 }
 0x197   : > { %867 = vmatmul.msk.f32.gmra.mxu2 %vm445_vm0, %v577_v8 }
 0x202   : > { %v631_v10 = vpop.f32.mrf.mxu2 }
 0x203   : > { %v632_v27 = vadd.f32 %v631_v10, %v585_v26 }
 0x205   : > { %v643_v30 = vmax.f32 %v632_v27, 0.0 }
 0x20a   : > { %v634_v11 = vpop.f32.mrf.mxu2 }
 0x20b   : > { %v635_v24 = vadd.f32 %v634_v11, %v590_v23 }
 0x20d   : > { %v644_v29 = vmax.f32 %v635_v24, 0.0 }
 0x212   : > { %v637_v17 = vpop.f32.mrf.mxu2 }
 0x213   : > { %v638_v21 = vadd.f32 %v637_v17, %v595_v19 }
 0x215   : > { %v645_v28 = vmax.f32 %v638_v21, 0.0 }
 0x21a   : > { %v640_v20 = vpop.f32.mrf.mxu2 }
 0x21b   : > { %v641_v22 = vadd.f32 %v640_v20, %v600_v18 }
 0x21d   : > { %v646_v25 = vmax.f32 %v641_v22, 0.0 }
 0x21f   : > { %679 = vmatpush.msra.mxu3 %v646_v25 }
 0x221   : > { %680 = vmatpush.msra.mxu3 %v645_v28 }
 0x223   : > { %681 = vmatpush.msra.mxu3 %v644_v29 }
 0x225   : > { %682 = vmatpush.msra.mxu3 %v643_v30 }
 0x226   : > { %868 = vmatmul.msk.f32.vlgmr.msra.gmra.mxu3 %vm445_vm0, %v647_v31 }
 0x22e   : > { %869 = vmatmul.msk.f32.gmra.mxu3 %vm445_vm0, %v648_v32 }
 0x2a9   : > { %v684_v33 = vpop.f32.mrf.mxu3 }
 0x2aa   : > { %v685_v35 = vadd.f32 %v684_v33, %v654_v34 }
 0x2ac   : > { %v690_v38 = vmax.f32 %v685_v35, 0.0 }
 0x2ae   : > { %v704_v43 = vmul.f32 %v697_v42, %v690_v38 }
 0x2b1   : > { %v687_v37 = vpop.f32.mrf.mxu3 }
 0x2b2   : > { %v688_v39 = vadd.f32 %v687_v37, %v659_v36 }
 0x2b4   : > { %v691_v40 = vmax.f32 %v688_v39, 0.0 }
 0x2b6   : > { %v705_v44 = vmul.f32 %v702_v41, %v691_v40 }
 0x2b8   : > { %v706_v45 = vadd.f32 %v705_v44, %v704_v43 }
 0x2ba   : > { %v707_v46 = vrot.slane %v706_v45, 4 }
 0x2bc   : > { %v708_v47 = vadd.f32 %v707_v46, %v706_v45 }
 0x2be   : > { %v709_v48 = vrot.slane %v708_v47, 2 }
 0x2c0   : > { %v710_v49 = vadd.f32 %v709_v48, %v708_v47 }
 0x2c2   : > { %v711_v51 = vrot.slane %v710_v49, 1 }
 0x2c4   : > { %v712_v53 = vadd.f32 %v711_v51, %v710_v49 }
 0x2c6   : > { %v720_v54 = vadd.f32 %v719_v52, %v712_v53 }
 0x2c8   : > { %v870_v55 = vmul.f32 -1.442695, %v720_v54 }
 0x2ca   : > { %939 = vpow2.f32 %v870_v55 }
 0x2d0   : > { %v940_v56 = vpop.eup %939 }
 0x2d1   : > { %v724_v57 = vadd.f32 1.0, %v940_v56 }
 0x2d3   : > { %941 = vrcp.f32 %v724_v57  ;;  %v736_v61 = vand.u32 2147483648, %v724_v57  ;;  %v734_v63 = vand.u32 2147483647, %v724_v57  ;;  %vm730_vm2 = vweird.f32 %v724_v57 }
 0x2d5   : > { %v737_v1 = vor.u32 1.1754944e-38, %v736_v61  ;;  %vm735_vm4 = vcmp.eq.f32.partialorder %v734_v63, 8.507059e+37 }
 0x2d9   : > { %v942_v58 = vpop.eup %941 }
 0x2da   : > { %v726_v59 = vmul.f32 %v942_v58, %v724_v57  ;;  %vm731_vm1 = vweird.f32 %v942_v58 }
 0x2db   : > { %vm732_vm3 = vmor %vm730_vm2, %vm731_vm1 }
 0x2dc   : > { %v727_v60 = vsub.f32 1.0, %v726_v59 }
 0x2de   : > { %v728_v62 = vmul.f32 %v942_v58, %v727_v60 }
 0x2e0   : > { %v729_v0 = vadd.f32 %v942_v58, %v728_v62 }
 0x2e2   : > { %v733_v2 = vsel %vm732_vm3, %v942_v58, %v729_v0 }
 0x2e3   : > { %v738_v3 = vsel %vm735_vm4, %v737_v1, %v733_v2 }
 0x2e4   : > { %740 = vst [vmem:[%s412_s10] sm:$0x1] %v738_v3 }
 0x2e5   : > { %1030 = shalt.err (!%p1027_p9)
}
 0x2e6   : > { %881 = dma.vmem_to_hbm [thread:$0]  (%p1176_p6), %s753_s23, 16, %s755_s15, %s742_s8  }
 0x2e7 PF: > { %s766_s20 = sand.u32 1, %s1061_s11   ;;  %p891_p11 = pnand %p841_p1, %p1182_p10 }
 0x2e8   : > { %s767_s26 = scalar_lea.sflag [#allocation6], %s766_s20 }
 0x2e9   : > { %p892_p12 = pneg %p891_p11 }
 0x2eb   : > { %1056 = dma.done.wait (%p892_p12), %s767_s26, 16  }
 0x2ec   : > { %1058 = vsyncadd (%p892_p12), %s767_s26, 4294967280  ;;  %p23_p13 = scmp.ge.s32.totalorder %s1158_s16, 4   ;;  %s1385_s11 = smov %s1065_s12 }
 0x2ed   : > { %s1386_s12 = smov %s1069_s13  ;;  %s1387_s13 = smov %s1170_s19 }
 0x2ee   : > { %s1388_s14 = smov %s1158_s16  ;;  %25 = sbr.rel (!%p23_p13) target bundleno = 8 (0x8), region = 145 }
 0x2f3   :  { %772 = vsyncpa [#allocation5], 1 }
 0x2f4   :  { %774 = vsyncpa [#allocation5 + $0x1], 1 }
 0x2f5   :  { %775 = vsyncpa [#allocation8], 1 }
 0x2f6   :  { %776 = vsyncpa [#allocation6], 1 }
 0x2f7   :  { %778 = vsyncpa [#allocation6 + $0x1], 1 }

</bundles_post_ra>
